<compile_context>
chip_gen: v6e
topology: v6e:2x2x1
jax: 0.10.0
libtpu: 0.0.40
codegen_flags: <defaults>
</compile_context>

<pallas_src>
import functools

import numpy as np

import jax
import jax.numpy as jnp
from jax.experimental import pallas as pl
from jax.experimental.pallas import tpu as pltpu


_INV_SQRT2 = 0.7071067811865476


# ---------------------------------------------------------------------------
# Kernels
# ---------------------------------------------------------------------------

def _ffn_resident_kernel(x_ref, w1_ref, b1_ref, w2_ref, b2_ref, o_ref, *, i_sub):
    """Resident-weight fast path: 1-D grid over row tiles, no scratch.

    x_ref:  (tm, H) token tile (compute dtype)
    w1_ref: (H, I)  full Linear(H->I) weight (pre-transposed), VMEM resident
    b1_ref: (1, I)  f32
    w2_ref: (I, H)  full Linear(I->H) weight (pre-transposed), VMEM resident
    b2_ref: (1, H)  f32
    o_ref:  (tm, H)

    The intermediate dim I is processed in `i_sub`-wide sub-chunks (static,
    unrolled) so the f32 GELU tensor is bounded to (tm, i_sub).
    """
    x = x_ref[...]
    I = w1_ref.shape[1]
    # Fold b2 into the accumulator init (hoisted broadcast, outside the loop).
    acc = jnp.broadcast_to(b2_ref[...], o_ref.shape).astype(jnp.float32)
    off = 0
    while off < I:                      # static Python loop, fully unrolled
        cur = min(i_sub, I - off)
        h = (jnp.dot(x, w1_ref[:, off:off + cur],
                     preferred_element_type=jnp.float32)
             + b1_ref[:, off:off + cur])
        # Exact (erf) GELU in f32 — matches HF BERT's default "gelu".
        h = 0.5 * h * (1.0 + jax.lax.erf(h * _INV_SQRT2))
        acc = acc + jnp.dot(h.astype(x.dtype), w2_ref[off:off + cur, :],
                            preferred_element_type=jnp.float32)
        off += cur
    o_ref[...] = acc.astype(o_ref.dtype)


def _ffn_chunked_kernel(x_ref, w1_ref, b1_ref, w2_ref, b2_ref, o_ref, acc_ref):
    """Streamed-weight path: grid=(row tiles, I-chunks), f32 scratch accum.

    w1_ref: (H, tI) chunk; b1_ref: (1, tI); w2_ref: (tI, H); b2_ref: (1, H).
    acc_ref: (tm, H) f32, resident across the I-chunk ("arbitrary") axis.
    """
    k = pl.program_id(1)

    @pl.when(k == 0)
    def _():
        # Fold b2 into the init instead of adding it in the epilogue.
        acc_ref[...] = jnp.broadcast_to(b2_ref[...], acc_ref.shape).astype(
            jnp.float32)

    x = x_ref[...]
    h = jnp.dot(x, w1_ref[...], preferred_element_type=jnp.float32) + b1_ref[...]
    h = 0.5 * h * (1.0 + jax.lax.erf(h * _INV_SQRT2))
    acc_ref[...] += jnp.dot(h.astype(x.dtype), w2_ref[...],
                            preferred_element_type=jnp.float32)

    @pl.when(k == pl.num_programs(1) - 1)
    def _():
        o_ref[...] = acc_ref[...].astype(o_ref.dtype)


# ---------------------------------------------------------------------------
# Sizing helpers
# ---------------------------------------------------------------------------

def _round_up(a, b):
    return (a + b - 1) // b * b


@functools.lru_cache(maxsize=None)
def _vmem_capacity_bytes():
    """Per-core VMEM capacity; conservative (v7x) fallback if unqueryable."""
    try:
        cap = int(pltpu.get_tpu_info().vmem_capacity_bytes)
        if cap > 0:
            return cap
    except Exception:
        pass
    return 64 << 20  # v7x per-TC VMEM — smallest across supported generations


@functools.lru_cache(maxsize=None)
def _buffered_supported():
    """One-time feature probe for pl.Buffered(1) single-buffering."""
    if not hasattr(pl, "Buffered"):
        return False

    def _copy(x_ref, o_ref):
        o_ref[...] = x_ref[...]

    try:
        fn = pl.pallas_call(
            _copy,
            out_shape=jax.ShapeDtypeStruct((8, 128), jnp.float32),
            grid_spec=pltpu.PrefetchScalarGridSpec(
                num_scalar_prefetch=0,
                grid=(1,),
                in_specs=[pl.BlockSpec((8, 128), lambda i: (0, 0),
                                       pipeline_mode=pl.Buffered(1))],
                out_specs=pl.BlockSpec((8, 128), lambda i: (0, 0)),
            ),
        )
        jax.jit(fn).lower(
            jax.ShapeDtypeStruct((8, 128), jnp.float32)).compile()
        return True
    except Exception:
        return False


def _estimate_vmem(n_chunks, t_i, H, I, tm, i_sub, w_item, x_item, out_item,
                   use_buffered):
    """Approximate per-step VMEM footprint (bytes) for a given configuration."""
    io = 2 * tm * H * (x_item + out_item)               # double-buffered x / out
    if n_chunks == 1:
        w_bufs = 1 if use_buffered else 2               # constant blocks
        weights = w_bufs * (2 * H * I * w_item + (I + H) * 4)
        inter = tm * i_sub * (4 + w_item)               # f32 h + compute cast
        acc = tm * H * 4                                # local f32 accumulator
    else:
        weights = 2 * (2 * H * t_i * w_item + (t_i + H) * 4)  # streamed, 2-buf
        inter = tm * t_i * (4 + w_item)
        acc = tm * H * 4                                # scratch accumulator
    return io + weights + inter + acc


def _pick_i_chunks(H, I, tm, i_sub, w_item, x_item, out_item, use_buffered,
                   budget_bytes):
    """Smallest number of I-chunks whose per-step VMEM footprint fits budget.

    Chunk width tI must be a multiple of 128 (lane dim of the W1 block /
    sublane dim of the W2 block) unless it is the whole of I.
    """
    fallback = (1, I)
    for n in range(1, I + 1):
        if I % n:
            continue
        t_i = I // n
        if n > 1 and t_i % 128:
            continue
        fallback = (n, t_i)
        if _estimate_vmem(n, t_i, H, I, tm, i_sub, w_item, x_item, out_item,
                          use_buffered) <= budget_bytes:
            return n, t_i
    return fallback


# ---------------------------------------------------------------------------
# pallas_call builder (cached per static configuration)
# ---------------------------------------------------------------------------

@functools.lru_cache(maxsize=None)
def _build_ffn_call(M, H, I, tm, n_chunks, t_i, i_sub, compute_dtype, out_dtype,
                    use_buffered, vmem_limit_bytes):
    compute_dtype = np.dtype(compute_dtype)
    out_dtype = np.dtype(out_dtype)
    w_item = compute_dtype.itemsize

    def spec(shape, index_map, constant=False):
        # Constant (non-revolving) blocks only need one buffer.
        if constant and use_buffered:
            return pl.BlockSpec(shape, index_map, pipeline_mode=pl.Buffered(1))
        return pl.BlockSpec(shape, index_map)

    n_row_tiles = M // tm
    weight_passes = 1 if n_chunks == 1 else n_row_tiles  # re-streamed if chunked
    cost = pl.CostEstimate(
        flops=4 * M * H * I,
        transcendentals=M * I,
        bytes_accessed=(M * H * (compute_dtype.itemsize + out_dtype.itemsize)
                        + weight_passes * 2 * H * I * w_item
                        + weight_passes * (I + H) * 4),
    )

    if n_chunks == 1:
        kernel = functools.partial(_ffn_resident_kernel, i_sub=i_sub)
        grid = (n_row_tiles,)
        in_specs = [
            spec((tm, H), lambda i: (i, 0)),                     # x tile
            spec((H, I), lambda i: (0, 0), constant=True),       # W1 (resident)
            spec((1, I), lambda i: (0, 0), constant=True),       # b1
            spec((I, H), lambda i: (0, 0), constant=True),       # W2 (resident)
            spec((1, H), lambda i: (0, 0), constant=True),       # b2
        ]
        out_specs = pl.BlockSpec((tm, H), lambda i: (i, 0))
        scratch_shapes = []
        dim_sem = ("parallel",)
    else:
        kernel = _ffn_chunked_kernel
        grid = (n_row_tiles, n_chunks)
        in_specs = [
            spec((tm, H), lambda i, k: (i, 0)),                  # x tile
            spec((H, t_i), lambda i, k: (0, k)),                 # W1 chunk
            spec((1, t_i), lambda i, k: (0, k)),                 # b1 chunk
            spec((t_i, H), lambda i, k: (k, 0)),                 # W2 chunk
            spec((1, H), lambda i, k: (0, 0), constant=True),    # b2 (constant)
        ]
        out_specs = pl.BlockSpec((tm, H), lambda i, k: (i, 0))
        scratch_shapes = [pltpu.VMEM((tm, H), jnp.float32)]
        dim_sem = ("parallel", "arbitrary")

    call = pl.pallas_call(
        kernel,
        out_shape=jax.ShapeDtypeStruct((M, H), out_dtype),
        grid_spec=pltpu.PrefetchScalarGridSpec(
            num_scalar_prefetch=0,
            grid=grid,
            in_specs=in_specs,
            out_specs=out_specs,
            scratch_shapes=scratch_shapes,
        ),
        compiler_params=pltpu.CompilerParams(
            dimension_semantics=dim_sem,
            vmem_limit_bytes=int(vmem_limit_bytes),
        ),
        cost_estimate=cost,
    )
    return jax.jit(call)


# ---------------------------------------------------------------------------
# Public wrapper
# ---------------------------------------------------------------------------

def bert_ffn(x, w1, b1, w2, b2, *, tm=512, compute_dtype=jnp.bfloat16,
             i_sub=512, vmem_budget_bytes=None):
    """BertFFN forward.

    x: [B, S, H]; w1: [H, I]; b1: [I]; w2: [I, H]; b2: [H] -> [B, S, H].
    Weights are stored pre-transposed relative to torch Linear.weight.
    Never host-syncs; safe to call from inside a larger jit.
    """
    B, S, H = x.shape
    I = w1.shape[1]
    M = B * S
    out_dtype = np.dtype(x.dtype)
    compute_dtype = np.dtype(compute_dtype)
    x_item = compute_dtype.itemsize
    w_item = compute_dtype.itemsize

    use_buffered = _buffered_supported()

    # Generation-aware VMEM accounting: hard cap = physical VMEM - headroom.
    cap = _vmem_capacity_bytes()
    hard_cap = max(cap - (8 << 20), 32 << 20)
    budget = (int(vmem_budget_bytes) if vmem_budget_bytes is not None
              else int(0.7 * hard_cap))

    # Row tile: multiple of 16 sublanes, never larger than the padded token
    # count. If M would give a single row tile, split it in two so the
    # "parallel" row axis can be sharded across both v7x TensorCores.
    tm_eff = _round_up(min(int(tm), M), 16)
    if _round_up(M, tm_eff) == tm_eff and M >= 32:
        tm_eff = _round_up((M + 1) // 2, 16)
    M_pad = _round_up(M, tm_eff)

    i_sub_eff = min(int(i_sub), I)

    # Decide whether weights stay VMEM-resident or the I dim is streamed.
    n_chunks, t_i = _pick_i_chunks(H, I, tm_eff, i_sub_eff, w_item, x_item,
                                   out_dtype.itemsize, use_buffered, budget)

    # If chunking is forced, weights are re-streamed per row tile; fatten the
    # row tile (up to 1024) to raise arithmetic intensity so v6e stays
    # MXU-bound instead of HBM-bound on weight traffic.
    if n_chunks > 1:
        tm_big = min(1024, _round_up(M, 16))
        if tm_big > tm_eff:
            nb, tb = _pick_i_chunks(H, I, tm_big, i_sub_eff, w_item, x_item,
                                    out_dtype.itemsize, use_buffered, budget)
            if _estimate_vmem(nb, tb, H, I, tm_big, i_sub_eff, w_item, x_item,
                              out_dtype.itemsize, use_buffered) <= budget:
                tm_eff, n_chunks, t_i = tm_big, nb, tb
                M_pad = _round_up(M, tm_eff)

    vmem_est = _estimate_vmem(n_chunks, t_i, H, I, tm_eff, i_sub_eff, w_item,
                              x_item, out_dtype.itemsize, use_buffered)
    vmem_limit = min(hard_cap, max(32 << 20, int(1.25 * vmem_est) + (8 << 20)))

    x2 = x.reshape(M, H).astype(compute_dtype)
    if M_pad != M:
        x2 = jnp.pad(x2, ((0, M_pad - M), (0, 0)))
    w1c = w1.astype(compute_dtype)
    w2c = w2.astype(compute_dtype)
    b1_2 = b1.reshape(1, I).astype(jnp.float32)
    b2_2 = b2.reshape(1, H).astype(jnp.float32)

    call = _build_ffn_call(M_pad, H, I, tm_eff, n_chunks, t_i, i_sub_eff,
                           compute_dtype, out_dtype, use_buffered,
                           int(vmem_limit))
    out = call(x2, w1c, b1_2, w2c, b2_2)
    return out[:M].reshape(B, S, H)


def _reference(x, w1, b1, w2, b2):
    h = x @ w1 + b1
    h = 0.5 * h * (1.0 + jax.lax.erf(h / jnp.sqrt(2.0)))
    return h @ w2 + b2


if __name__ == "__main__":
    # Small, BERT-like config: hidden=32, intermediate=64, batch=2, seq=8.
    B, S, H, I = 2, 8, 32, 64

    key = jax.random.PRNGKey(0)
    kx, k1, k2, k3, k4 = jax.random.split(key, 5)

    x = jax.random.normal(kx, (B, S, H), dtype=jnp.float32)
    # Deterministic synthetic parameters (Linear.weight^T layout).
    w1 = jax.random.normal(k1, (H, I), dtype=jnp.float32) * 0.02
    b1 = jax.random.normal(k2, (I,), dtype=jnp.float32) * 0.02
    w2 = jax.random.normal(k3, (I, H), dtype=jnp.float32) * 0.02
    b2 = jax.random.normal(k4, (H,), dtype=jnp.float32) * 0.02

    ref = _reference(x, w1, b1, w2, b2)

    # Exact f32 path: must match the reference tightly.
    out_f32 = jax.block_until_ready(
        bert_ffn(x, w1, b1, w2, b2, compute_dtype=jnp.float32))
    assert out_f32.shape == (B, S, H)
    assert jnp.allclose(out_f32, ref, atol=1e-5, rtol=1e-5), "f32 mismatch"

    # Default mixed-precision path (bf16 operands, f32 accumulation).
    out_bf16 = jax.block_until_ready(bert_ffn(x, w1, b1, w2, b2))
    assert out_bf16.shape == (B, S, H)
    assert out_bf16.dtype == x.dtype
    assert jnp.allclose(out_bf16, ref, atol=2e-2, rtol=2e-2), "bf16 mismatch"

    # Larger shape exercising two row tiles (megacore split) and in-kernel
    # I sub-chunking (I > 512) on the resident-weight path.
    B2, S2, H2, I2 = 2, 64, 128, 1024
    kx2, k5, k6, k7, k8 = jax.random.split(jax.random.PRNGKey(1), 5)
    xb = jax.random.normal(kx2, (B2, S2, H2), dtype=jnp.float32)
    w1b = jax.random.normal(k5, (H2, I2), dtype=jnp.float32) * 0.02
    b1b = jax.random.normal(k6, (I2,), dtype=jnp.float32) * 0.02
    w2b = jax.random.normal(k7, (I2, H2), dtype=jnp.float32) * 0.02
    b2b = jax.random.normal(k8, (H2,), dtype=jnp.float32) * 0.02

    ref2 = _reference(xb, w1b, b1b, w2b, b2b)
    out2 = jax.block_until_ready(bert_ffn(xb, w1b, b1b, w2b, b2b))
    assert out2.shape == (B2, S2, H2)
    assert jnp.allclose(out2, ref2, atol=2e-2, rtol=2e-2), "large-shape mismatch"

    print("KERNEL_OK")
</pallas_src>

<mosaic_0001>
module attributes {stable_mosaic.version = 11 : i64} {
  func.func @_ffn_resident_kernel(%arg0: i32, %arg1: memref<16x32xf32, #tpu.memory_space<vmem>>, %arg2: memref<32x64xf32, #tpu.memory_space<vmem>>, %arg3: memref<1x64xf32, #tpu.memory_space<vmem>>, %arg4: memref<64x32xf32, #tpu.memory_space<vmem>>, %arg5: memref<1x32xf32, #tpu.memory_space<vmem>>, %arg6: memref<16x32xf32, #tpu.memory_space<vmem>>) attributes {dimension_semantics = [#tpu.dimension_semantics<parallel>], iteration_bounds = array<i64: 1>, scalar_prefetch = 0 : i64, scratch_operands = 0 : i64, tpu.core_type = #tpu.core_type<tc>, window_params = [{transform_indices = @transform_0, window_bounds = array<i64: 16, 32>}, {pipeline_mode = #tpu.pipeline_mode<synchronous>, transform_indices = @transform_1, window_bounds = array<i64: 32, 64>}, {pipeline_mode = #tpu.pipeline_mode<synchronous>, transform_indices = @transform_2, window_bounds = array<i64: 1, 64>}, {pipeline_mode = #tpu.pipeline_mode<synchronous>, transform_indices = @transform_3, window_bounds = array<i64: 64, 32>}, {pipeline_mode = #tpu.pipeline_mode<synchronous>, transform_indices = @transform_4, window_bounds = array<i64: 1, 32>}, {transform_indices = @transform_5, window_bounds = array<i64: 16, 32>}]} {
    %c0 = arith.constant 0 : index
    %c0_0 = arith.constant 0 : index
    %0 = vector.load %arg1[%c0, %c0_0] : memref<16x32xf32, #tpu.memory_space<vmem>>, vector<16x32xf32>
    %c0_1 = arith.constant 0 : index
    %c0_2 = arith.constant 0 : index
    %1 = vector.load %arg5[%c0_1, %c0_2] : memref<1x32xf32, #tpu.memory_space<vmem>>, vector<1x32xf32>
    %2 = vector.shape_cast %1 : vector<1x32xf32> to vector<1x32xf32>
    %3 = vector.broadcast %2 : vector<1x32xf32> to vector<16x32xf32>
    %c0_3 = arith.constant 0 : index
    %c0_4 = arith.constant 0 : index
    %4 = vector.load %arg2[%c0_3, %c0_4] : memref<32x64xf32, #tpu.memory_space<vmem>>, vector<32x64xf32>
    %cst = arith.constant dense<0.000000e+00> : vector<16x64xf32>
    %5 = tpu.matmul %0, %4, %cst {dimension_numbers = #tpu.dot_dimension_numbers<[1], [0], [0], [1], [0, 0, 1, 1], [], []>} : vector<16x32xf32>, vector<32x64xf32>, vector<16x64xf32> -> vector<16x64xf32>
    %c0_5 = arith.constant 0 : index
    %c0_6 = arith.constant 0 : index
    %6 = vector.load %arg3[%c0_5, %c0_6] : memref<1x64xf32, #tpu.memory_space<vmem>>, vector<1x64xf32>
    %7 = vector.broadcast %6 : vector<1x64xf32> to vector<16x64xf32>
    %8 = arith.addf %5, %7 : vector<16x64xf32>
    %cst_7 = arith.constant 5.000000e-01 : f32
    %9 = vector.broadcast %cst_7 : f32 to vector<16x64xf32>
    %10 = arith.mulf %9, %8 : vector<16x64xf32>
    %cst_8 = arith.constant 0.707106769 : f32
    %11 = vector.broadcast %cst_8 : f32 to vector<16x64xf32>
    %12 = arith.mulf %8, %11 : vector<16x64xf32>
    %13 = math.erf %12 : vector<16x64xf32>
    %cst_9 = arith.constant 1.000000e+00 : f32
    %14 = vector.broadcast %cst_9 : f32 to vector<16x64xf32>
    %15 = arith.addf %14, %13 : vector<16x64xf32>
    %16 = arith.mulf %10, %15 : vector<16x64xf32>
    %c0_10 = arith.constant 0 : index
    %c0_11 = arith.constant 0 : index
    %17 = vector.load %arg4[%c0_10, %c0_11] : memref<64x32xf32, #tpu.memory_space<vmem>>, vector<64x32xf32>
    %cst_12 = arith.constant dense<0.000000e+00> : vector<16x32xf32>
    %18 = tpu.matmul %16, %17, %cst_12 {dimension_numbers = #tpu.dot_dimension_numbers<[1], [0], [0], [1], [0, 0, 1, 1], [], []>} : vector<16x64xf32>, vector<64x32xf32>, vector<16x32xf32> -> vector<16x32xf32>
    %19 = arith.addf %3, %18 : vector<16x32xf32>
    %c0_13 = arith.constant 0 : index
    %c0_14 = arith.constant 0 : index
    %20 = vector.load %arg6[%c0_13, %c0_14] : memref<16x32xf32, #tpu.memory_space<vmem>>, vector<16x32xf32>
    tpu.vector_store %arg6[%c0_13, %c0_14], %19 {strides = array<i32>} : memref<16x32xf32, #tpu.memory_space<vmem>>, vector<16x32xf32>,
    return
  }
  func.func @transform_0(%arg0: i32) -> (i32, i32) {
    %c0_i32 = arith.constant 0 : i32
    %c0_i32_0 = arith.constant 0 : i32
    return %arg0, %c0_i32 : i32, i32
  }
  func.func @transform_1(%arg0: i32) -> (i32, i32) {
    %c0_i32 = arith.constant 0 : i32
    %c0_i32_0 = arith.constant 0 : i32
    %c0_i32_1 = arith.constant 0 : i32
    return %c0_i32, %c0_i32_0 : i32, i32
  }
  func.func @transform_2(%arg0: i32) -> (i32, i32) {
    %c0_i32 = arith.constant 0 : i32
    %c0_i32_0 = arith.constant 0 : i32
    %c0_i32_1 = arith.constant 0 : i32
    return %c0_i32, %c0_i32_0 : i32, i32
  }
  func.func @transform_3(%arg0: i32) -> (i32, i32) {
    %c0_i32 = arith.constant 0 : i32
    %c0_i32_0 = arith.constant 0 : i32
    %c0_i32_1 = arith.constant 0 : i32
    return %c0_i32, %c0_i32_0 : i32, i32
  }
  func.func @transform_4(%arg0: i32) -> (i32, i32) {
    %c0_i32 = arith.constant 0 : i32
    %c0_i32_0 = arith.constant 0 : i32
    %c0_i32_1 = arith.constant 0 : i32
    return %c0_i32, %c0_i32_0 : i32, i32
  }
  func.func @transform_5(%arg0: i32) -> (i32, i32) {
    %c0_i32 = arith.constant 0 : i32
    %c0_i32_0 = arith.constant 0 : i32
    return %arg0, %c0_i32 : i32, i32
  }
}

</mosaic_0001>

<bundles_post_ra>
// kernel: tpu_custom_call.1
= control target key start
LH: loop header
LB: loop body
LE: loop exit
PB: predicated region body
PF: predicated region fallthrough
CT: control target
= control target key end

     0   :  { %vm41_vm0 = vcmask 261120   ;;  %s412_s0 = inlined_call_operand.vmem [shape: f32[16,32], index: 0, kind: input, shape index: {}]   ;;  %s413_s1 = inlined_call_operand.vmem [shape: f32[32,64], index: 1, kind: input, shape index: {}]   ;;  %s414_s2 = inlined_call_operand.vmem [shape: f32[1,64], index: 2, kind: input, shape index: {}]   ;;  %s415_s3 = inlined_call_operand.vmem [shape: f32[64,32], index: 3, kind: input, shape index: {}]   ;;  %s416_s4 = inlined_call_operand.vmem [shape: f32[1,32], index: 4, kind: input, shape index: {}]   ;;  %s417_s5 = inlined_call_operand.hbm [shape: f32[16,32], index: 5, kind: output, shape index: {}]  }
   0x1   :  { %v33_v0 = vld [vmem:[%s413_s1 + $0x18] sm:$0xff]  ;;  %v32_v1 = vld [vmem:[%s413_s1 + $0x10] sm:$0xff]  ;;  %v21_v2 = vld [vmem:[%s412_s0] sm:$0xff] }
   0x2   :  { %265 = vmatprep.subr.mxu0 %v33_v0  ;;  %v31_v3 = vld [vmem:[%s413_s1 + $0x8] sm:$0xff]  ;;  %273 = vmatprep.mubr.msk.f32.mxu0 %vm41_vm0, %v21_v2 }
   0x3   :  { %266 = vmatpush3.msra.mxu0 %v33_v0 }
   0x4   :  { %10 = vsyncpa [#allocation3], 0  ;;  %267 = vmatprep.subr.mxu0 %v32_v1  ;;  %v30_v4 = vld [vmem:[%s413_s1] sm:$0xff]  ;;  %v22_v5 = vld [vmem:[%s412_s0 + $0x8] sm:$0xff]  ;;  %vm141_vm1 = vcmask 523264   ;;  %s324_s21 = smov [#allocation2]  }
   0x5   :  { %268 = vmatpush3.msra.mxu0 %v32_v1  ;;  %v140_v6 = vld [vmem:[%s415_s3 + $0x38] sm:$0xff]  ;;  %v139_v7 = vld [vmem:[%s415_s3 + $0x30] sm:$0xff]  ;;  %v138_v8 = vld [vmem:[%s415_s3 + $0x28] sm:$0xff]  ;;  %s232_s22 = sshll.u32 %s324_s21, 4  ;;  %s233_s22 = int_to_ptr.vmem [resolvable:$true] %s232_s22 }
   0x6   :  { %269 = vmatprep.subr.mxu0 %v31_v3  ;;  %276 = vmatprep.subr.mxu1 %v140_v6  ;;  %v137_v9 = vld [vmem:[%s415_s3 + $0x20] sm:$0xff]  ;;  %v136_v10 = vld [vmem:[%s415_s3 + $0x18] sm:$0xff]  ;;  %v135_v11 = vld [vmem:[%s415_s3 + $0x10] sm:$0xff]  ;;  %s302_s23 = scalar_lea.vmem %s233_s22, 256  ;;  %p307_p1 = scmp.lt.s32.totalorder %s233_s22, %s233_s22 }
   0x7   :  { %270 = vmatpush3.msra.mxu0 %v31_v3  ;;  %277 = vmatpush3.msra.mxu1 %v140_v6  ;;  %v134_v12 = vld [vmem:[%s415_s3 + $0x8] sm:$0xff]  ;;  %v133_v13 = vld [vmem:[%s415_s3] sm:$0xff]  ;;  %p303_p0 = scmp.ne.s32.totalorder %s233_s22, %s302_s23  ;;  %p308_p2 = scmp.lt.s32.totalorder %s302_s23, %s302_s23 }
   0x8   :  { %271 = vmatprep.subr.mxu0 %v30_v4  ;;  %278 = vmatprep.subr.mxu1 %v139_v7  ;;  %v244_v14 = vld [vmem:[%s414_s2] ss:$0 sm:$0xff] }
   0x9   :  { %272 = vmatpush3.msra.mxu0 %v30_v4  ;;  %279 = vmatpush3.msra.mxu1 %v139_v7  ;;  %v243_v29 = vld [vmem:[%s416_s4] ss:$0 sm:$0xff]  ;;  %p309_p3 = por %p308_p2, %p307_p1 }
   0xa   :  { %274 = vmatmul.mubr.msk.f32.vlgmr.msra.gmra.mxu0 %vm41_vm0, %v22_v5  ;;  %280 = vmatprep.subr.mxu1 %v138_v8 }
   0xb   :  { %281 = vmatpush3.msra.mxu1 %v138_v8  ;;  %p310_p4 = pnand %p309_p3, %p303_p0 }
   0xc   :  { %282 = vmatprep.subr.mxu1 %v137_v9 }
   0xd   :  { %283 = vmatpush3.msra.mxu1 %v137_v9 }
   0xe   :  { %284 = vmatprep.subr.mxu1 %v136_v10 }
   0xf   :  { %285 = vmatpush3.msra.mxu1 %v136_v10 }
  0x10   :  { %286 = vmatprep.subr.mxu1 %v135_v11 }
  0x11   :  { %287 = vmatpush3.msra.mxu1 %v135_v11 }
  0x12   :  { %288 = vmatprep.subr.mxu1 %v134_v12 }
  0x13   :  { %289 = vmatpush3.msra.mxu1 %v134_v12 }
  0x14   :  { %290 = vmatprep.subr.mxu1 %v133_v13 }
  0x15   :  { %291 = vmatpush3.msra.mxu1 %v133_v13 }
  0xca   :  { %v275_v15 = vpop.f32.mrf.mxu0 }
  0xcb   :  { %v120_v16 = vadd.f32 %v275_v15, %v244_v14 }
  0xcc   :  { %v114_v17 = vpop.f32.mrf.mxu0 }
  0xcd   :  { %v126_v18 = vmul.f32 0.70710677, %v120_v16  ;;  %v115_v19 = vadd.f32 %v244_v14, %v114_v17  ;;  %v124_v26 = vmul.f32 0.5, %v120_v16 }
  0xcf   :  { %298 = verf.f32 %v126_v18  ;;  %v125_v20 = vmul.f32 0.70710677, %v115_v19  ;;  %v123_v24 = vmul.f32 0.5, %v115_v19 }
  0xd1   :  { %300 = verf.f32 %v125_v20 }
  0xdc   :  { %v299_v21 = vpop.eup %298 }
  0xdd   :  { %v130_v23 = vadd.f32 1.0, %v299_v21 }
  0xde   :  { %v301_v22 = vpop.eup %300 }
  0xdf   :  { %v129_v25 = vadd.f32 1.0, %v301_v22  ;;  %v132_v28 = vmul.f32 %v130_v23, %v124_v26 }
  0xe1   :  { %v131_v27 = vmul.f32 %v129_v25, %v123_v24 }
  0xe3   :  { %292 = vmatprep.mubr.msk.f32.mxu1 %vm141_vm1, %v131_v27 }
  0xe4   :  { %293 = vmatmul.mubr.msk.f32.vlgmr.msra.gmra.mxu1 %vm141_vm1, %v132_v28 }
 0x1a4   :  { %v294_v30 = vpop.f32.mrf.mxu1 }
 0x1a5   :  { %v224_v31 = vadd.f32 %v294_v30, %v243_v29 }
 0x1a6   :  { %v214_v32 = vpop.f32.mrf.mxu1 }
 0x1a7   :  { %226 = vst.msk [vmem:[#allocation2 + $0x8] sm:$0xff] %vm41_vm0, %v224_v31  ;;  %v223_v33 = vadd.f32 %v243_v29, %v214_v32 }
 0x1a9   :  { %225 = vst.msk [vmem:[#allocation2] sm:$0xff] %vm41_vm0, %v223_v33 }
 0x1aa   :  { %313 = shalt.err (!%p310_p4)
}
 0x1ab   :  { %s325_s24 = smov 128   ;;  %s326_s4 = smov 8  }
 0x1ac   :  { %238 = dma.vmem_to_hbm [thread:$0]  %s233_s22, 256, %s417_s5, [#allocation3], %s325_s24, %s325_s24, %s326_s4  }
 0x1ad   :  { %322 = dma.done.wait [#allocation3], 256  }
 0x1ae   :  { %323 = vsyncadd [#allocation3], 4294967040 }
 0x1af   :  { %242 = vsyncpa [#allocation3], 1 }

</bundles_post_ra>
